<compile_context>
chip_gen: v7x
topology: tpu7x:2x2x1
jax: 0.10.0
libtpu: 0.0.40
codegen_flags: <defaults>
</compile_context>

<pallas_src>
import jax
import jax.numpy as jnp
from jax.experimental import pallas as pl
from jax.experimental.pallas import tpu as pltpu

LANE = 128  # lane-dense logits width (sliced back to num_classes outside)

# --- small synthetic demo shapes consistent with the module's forward ---
N, C, H, W = 2, 4, 16, 16
RES_DIM = 1000          # resnet(pixel_values) output dim
VIT_HIDDEN = 32         # vit.config.hidden_size (pooler_output dim)
NUM_CLASSES = 5


def _make_owl_kernel(c, hw, hidden, pad, b1_row, w2_row0):
    """Builds the fused forward kernel for fixed (compile-time) dims."""

    def kernel(x_ref, w_ref, out_ref):
        # ---- stage 1 (VPU): z = b1 + sum_c mean_pool_c * w1[c, :] ----------
        # The K=C (=4) contraction is done as C unrolled broadcast madds
        # instead of a nearly-empty MXU dot; the bias row seeds the accumulator
        # so there is no separate bias add.
        acc = w_ref[b1_row:b1_row + 1, :]                       # (1, pad+hidden)
        for ch in range(c):                                     # fully unrolled
            pooled_c = jnp.sum(x_ref[:, ch * hw:(ch + 1) * hw],
                               axis=-1, keepdims=True)          # (Nblk, 1) lane-reduce
            acc = acc + pooled_c * w_ref[ch:ch + 1, :]          # (Nblk, pad+hidden)

        res_logits = acc[:, :pad]                               # folded-ResNet logits
        vit_act = jnp.tanh(acc[:, pad:pad + hidden])            # ViT pooler (EUP)

        # ---- stage 2 (MXU): ViT half of the classifier, lane-dense out -----
        w2 = w_ref[w2_row0:w2_row0 + hidden, :pad]              # (hidden, 128) aligned
        out_ref[...] = (res_logits +
                        jnp.dot(vit_act, w2, preferred_element_type=jnp.float32)
                        ).astype(out_ref.dtype)

    return kernel


class OwlResNetPallas:
    """Fused OwlResNetModel forward (frozen synthetic backbones + classifier).

    All constant folding / packing happens once in __init__; the per-call path
    is a single jitted function: x DMA + one tiny Pallas kernel + slice.
    """

    BATCH_TILE = 256  # per-grid-step rows once the batch is large enough to shard

    def __init__(self, params, image_size):
        w_res, b_res, w_vit, b_vit, w_cls, b_cls = params
        self.c, res_dim = w_res.shape
        self.hidden = w_vit.shape[1]
        self.num_classes = w_cls.shape[1]
        self.h, self.w = image_size
        self.hw = self.h * self.w
        assert w_cls.shape[0] == res_dim + self.hidden
        assert self.num_classes <= LANE and self.hidden <= LANE

        # ---- fold + pack the frozen weights ONCE (not per forward call) ----
        wc_res = w_cls[:res_dim, :]                 # (1000, ncls)
        wc_vit = w_cls[res_dim:, :]                 # (hidden, ncls)
        # NOTE: folding the linear ResNet branch reassociates the reference's
        # single K=(1000+hidden) f32 contraction into (w_res @ wc_res) then a
        # K=C contraction; well inside 1e-5 at these magnitudes — re-validate
        # against real pretrained-checkpoint magnitudes.
        w_res_eff = w_res @ wc_res                  # (C, ncls)
        b_res_eff = b_res @ wc_res                  # (ncls,)

        cols = LANE + self.hidden
        w1 = jnp.zeros((self.c, cols), jnp.float32)
        w1 = w1.at[:, :self.num_classes].set(w_res_eff)
        w1 = w1.at[:, LANE:LANE + self.hidden].set(w_vit)
        w1 = w1 * (1.0 / self.hw)                   # fold the mean-pool scale

        b1 = jnp.zeros((cols,), jnp.float32)
        b1 = b1.at[:self.num_classes].set(b_res_eff + b_cls)
        b1 = b1.at[LANE:LANE + self.hidden].set(b_vit)

        self.b1_row = self.c                                  # bias row
        self.w2_row0 = -(-(self.c + 1) // 8) * 8              # next multiple of 8
        rows = self.w2_row0 + self.hidden
        packed = jnp.zeros((rows, cols), jnp.float32)
        packed = packed.at[:self.c, :].set(w1)
        packed = packed.at[self.b1_row, :].set(b1)
        packed = packed.at[self.w2_row0:self.w2_row0 + self.hidden,
                           :self.num_classes].set(wc_vit)
        self.w_packed = jax.device_put(packed)                # cached on device

        self._kernel = _make_owl_kernel(self.c, self.hw, self.hidden, LANE,
                                        self.b1_row, self.w2_row0)
        self._forward = jax.jit(self._forward_impl)

    def __call__(self, pixel_values):
        return self._forward(pixel_values, self.w_packed)

    def _forward_impl(self, pixel_values, w_packed):
        n, c, h, w = pixel_values.shape
        if (c, h, w) != (self.c, self.h, self.w):
            raise ValueError(
                f"expected input (*, {self.c}, {self.h}, {self.w}); "
                f"got {pixel_values.shape}")
        x = pixel_values.reshape(n, c * h * w).astype(jnp.float32)

        cost = pl.CostEstimate(
            flops=int(n * (c * h * w + 2 * c * (LANE + self.hidden)
                           + 2 * self.hidden * LANE)),
            transcendentals=int(n * self.hidden),
            bytes_accessed=int(x.size * 4 + w_packed.size * 4 + n * LANE * 4))

        if n >= 2 * self.BATCH_TILE:
            # Large batch: 1-D parallel grid over batch tiles so both v7x
            # TensorCores are used (pure overhead at tiny N, hence the gate).
            tile = self.BATCH_TILE
            n_pad = -(-n // tile) * tile
            if n_pad != n:
                x = jnp.pad(x, ((0, n_pad - n), (0, 0)))
            out = pl.pallas_call(
                self._kernel,
                out_shape=jax.ShapeDtypeStruct((n_pad, LANE), jnp.float32),
                grid=(n_pad // tile,),
                in_specs=[pl.BlockSpec((tile, c * h * w), lambda i: (i, 0)),
                          pl.BlockSpec(w_packed.shape, lambda i: (0, 0))],
                out_specs=pl.BlockSpec((tile, LANE), lambda i: (i, 0)),
                compiler_params=pltpu.CompilerParams(
                    dimension_semantics=("parallel",)),
                cost_estimate=cost,
            )(x, w_packed)
        else:
            # Tiny batch: gridless, whole-array, single-buffered VMEM residents
            # (2 input DMAs + 1 output DMA total).
            vmem = pl.BlockSpec(memory_space=pltpu.MemorySpace.VMEM)
            out = pl.pallas_call(
                self._kernel,
                out_shape=jax.ShapeDtypeStruct((n, LANE), jnp.float32),
                in_specs=[vmem, vmem],
                out_specs=vmem,
                cost_estimate=cost,
            )(x, w_packed)

        return out[:n, :self.num_classes]


def make_params(key):
    ks = jax.random.split(key, 6)
    w_res = 0.02 * jax.random.normal(ks[0], (C, RES_DIM), jnp.float32)
    b_res = 0.01 * jax.random.normal(ks[1], (RES_DIM,), jnp.float32)
    w_vit = 0.02 * jax.random.normal(ks[2], (C, VIT_HIDDEN), jnp.float32)
    b_vit = 0.01 * jax.random.normal(ks[3], (VIT_HIDDEN,), jnp.float32)
    w_cls = 0.02 * jax.random.normal(ks[4], (RES_DIM + VIT_HIDDEN, NUM_CLASSES),
                                     jnp.float32)
    b_cls = 0.01 * jax.random.normal(ks[5], (NUM_CLASSES,), jnp.float32)
    return (w_res, b_res, w_vit, b_vit, w_cls, b_cls)


def reference_forward(pixel_values, params):
    """Un-folded math mirroring the PyTorch forward exactly."""
    w_res, b_res, w_vit, b_vit, w_cls, b_cls = params
    n, c, h, w = pixel_values.shape
    pooled = pixel_values.reshape(n, c, h * w).mean(axis=-1)
    res_feat = pooled @ w_res + b_res                   # Dropout(p=0) == identity
    vit_feat = jnp.tanh(pooled @ w_vit + b_vit)         # pooler_output
    full_embeddings = jnp.concatenate([res_feat, vit_feat], axis=1)
    return full_embeddings @ w_cls + b_cls


if __name__ == "__main__":
    key = jax.random.PRNGKey(0)
    k_x, k_p = jax.random.split(key)
    pixel_values = jax.random.uniform(k_x, (N, C, H, W), jnp.float32)  # do_rescale=False
    params = make_params(k_p)

    model = OwlResNetPallas(params, image_size=(H, W))
    logits = jax.block_until_ready(model(pixel_values))
    ref = reference_forward(pixel_values, params)

    assert logits.shape == (N, NUM_CLASSES)
    assert jnp.allclose(logits, ref, rtol=1e-5, atol=1e-5), (
        f"mismatch: max abs err {float(jnp.max(jnp.abs(logits - ref)))}")
    print("KERNEL_OK")
</pallas_src>

<mosaic_0001>
module attributes {stable_mosaic.version = 11 : i64} {
  func.func @kernel(%arg0: memref<2x1024xf32, #tpu.memory_space<vmem>>, %arg1: memref<40x160xf32, #tpu.memory_space<vmem>>, %arg2: memref<2x128xf32, #tpu.memory_space<vmem>>) attributes {dimension_semantics = [], scalar_prefetch = 0 : i64, scratch_operands = 0 : i64, tpu.core_type = #tpu.core_type<tc>} {
    %c4 = arith.constant 4 : index
    %c0 = arith.constant 0 : index
    %0 = vector.load %arg1[%c4, %c0] : memref<40x160xf32, #tpu.memory_space<vmem>>, vector<1x160xf32>
    %c0_0 = arith.constant 0 : index
    %c0_1 = arith.constant 0 : index
    %1 = vector.load %arg0[%c0_0, %c0_1] : memref<2x1024xf32, #tpu.memory_space<vmem>>, vector<2x256xf32>
    %cst = arith.constant dense<0.000000e+00> : vector<2xf32>
    %2 = vector.multi_reduction <add>, %1, %cst [1] : vector<2x256xf32> to vector<2xf32>
    %3 = vector.shape_cast %2 : vector<2xf32> to vector<2x1xf32>
    %c0_2 = arith.constant 0 : index
    %c0_3 = arith.constant 0 : index
    %4 = vector.load %arg1[%c0_2, %c0_3] : memref<40x160xf32, #tpu.memory_space<vmem>>, vector<1x160xf32>
    %5 = vector.broadcast %3 : vector<2x1xf32> to vector<2x160xf32>
    %6 = vector.broadcast %4 : vector<1x160xf32> to vector<2x160xf32>
    %7 = arith.mulf %5, %6 : vector<2x160xf32>
    %8 = vector.broadcast %0 : vector<1x160xf32> to vector<2x160xf32>
    %9 = arith.addf %8, %7 : vector<2x160xf32>
    %c0_4 = arith.constant 0 : index
    %c256 = arith.constant 256 : index
    %10 = vector.load %arg0[%c0_4, %c256] : memref<2x1024xf32, #tpu.memory_space<vmem>>, vector<2x256xf32>
    %cst_5 = arith.constant dense<0.000000e+00> : vector<2xf32>
    %11 = vector.multi_reduction <add>, %10, %cst_5 [1] : vector<2x256xf32> to vector<2xf32>
    %12 = vector.shape_cast %11 : vector<2xf32> to vector<2x1xf32>
    %c1 = arith.constant 1 : index
    %c0_6 = arith.constant 0 : index
    %13 = vector.load %arg1[%c1, %c0_6] : memref<40x160xf32, #tpu.memory_space<vmem>>, vector<1x160xf32>
    %14 = vector.broadcast %12 : vector<2x1xf32> to vector<2x160xf32>
    %15 = vector.broadcast %13 : vector<1x160xf32> to vector<2x160xf32>
    %16 = arith.mulf %14, %15 : vector<2x160xf32>
    %17 = arith.addf %9, %16 : vector<2x160xf32>
    %c0_7 = arith.constant 0 : index
    %c512 = arith.constant 512 : index
    %18 = vector.load %arg0[%c0_7, %c512] : memref<2x1024xf32, #tpu.memory_space<vmem>>, vector<2x256xf32>
    %cst_8 = arith.constant dense<0.000000e+00> : vector<2xf32>
    %19 = vector.multi_reduction <add>, %18, %cst_8 [1] : vector<2x256xf32> to vector<2xf32>
    %20 = vector.shape_cast %19 : vector<2xf32> to vector<2x1xf32>
    %c2 = arith.constant 2 : index
    %c0_9 = arith.constant 0 : index
    %21 = vector.load %arg1[%c2, %c0_9] : memref<40x160xf32, #tpu.memory_space<vmem>>, vector<1x160xf32>
    %22 = vector.broadcast %20 : vector<2x1xf32> to vector<2x160xf32>
    %23 = vector.broadcast %21 : vector<1x160xf32> to vector<2x160xf32>
    %24 = arith.mulf %22, %23 : vector<2x160xf32>
    %25 = arith.addf %17, %24 : vector<2x160xf32>
    %c0_10 = arith.constant 0 : index
    %c768 = arith.constant 768 : index
    %26 = vector.load %arg0[%c0_10, %c768] : memref<2x1024xf32, #tpu.memory_space<vmem>>, vector<2x256xf32>
    %cst_11 = arith.constant dense<0.000000e+00> : vector<2xf32>
    %27 = vector.multi_reduction <add>, %26, %cst_11 [1] : vector<2x256xf32> to vector<2xf32>
    %28 = vector.shape_cast %27 : vector<2xf32> to vector<2x1xf32>
    %c3 = arith.constant 3 : index
    %c0_12 = arith.constant 0 : index
    %29 = vector.load %arg1[%c3, %c0_12] : memref<40x160xf32, #tpu.memory_space<vmem>>, vector<1x160xf32>
    %30 = vector.broadcast %28 : vector<2x1xf32> to vector<2x160xf32>
    %31 = vector.broadcast %29 : vector<1x160xf32> to vector<2x160xf32>
    %32 = arith.mulf %30, %31 : vector<2x160xf32>
    %33 = arith.addf %25, %32 : vector<2x160xf32>
    %34 = vector.extract_strided_slice %33 {offsets = [0, 0], sizes = [2, 128], strides = [1, 1]} : vector<2x160xf32> to vector<2x128xf32>
    %35 = vector.extract_strided_slice %33 {offsets = [0, 128], sizes = [2, 32], strides = [1, 1]} : vector<2x160xf32> to vector<2x32xf32>
    %36 = math.tanh %35 : vector<2x32xf32>
    %c8 = arith.constant 8 : index
    %c0_13 = arith.constant 0 : index
    %37 = vector.load %arg1[%c8, %c0_13] : memref<40x160xf32, #tpu.memory_space<vmem>>, vector<32x128xf32>
    %cst_14 = arith.constant dense<0.000000e+00> : vector<2x128xf32>
    %38 = tpu.matmul %36, %37, %cst_14 {dimension_numbers = #tpu.dot_dimension_numbers<[1], [0], [0], [1], [0, 0, 1, 1], [], []>} : vector<2x32xf32>, vector<32x128xf32>, vector<2x128xf32> -> vector<2x128xf32>
    %39 = arith.addf %34, %38 : vector<2x128xf32>
    %c0_15 = arith.constant 0 : index
    %c0_16 = arith.constant 0 : index
    %40 = vector.load %arg2[%c0_15, %c0_16] : memref<2x128xf32, #tpu.memory_space<vmem>>, vector<2x128xf32>
    tpu.vector_store %arg2[%c0_15, %c0_16], %39 {strides = array<i32>} : memref<2x128xf32, #tpu.memory_space<vmem>>, vector<2x128xf32>,
    return
  }
}

</mosaic_0001>

<bundles_post_ra>
// kernel: _forward_impl.1
= control target key start
LH: loop header
LB: loop body
LE: loop exit
PB: predicated region body
PF: predicated region fallthrough
CT: control target
= control target key end

     0   :  { %vm26_vm0 = vcmask 1041408   ;;  %v34_v1 = vlaneseq  ;;  %s395_s0 = inlined_call_operand.vmem [shape: f32[2,1024], index: 0, kind: input, shape index: {}]   ;;  %s396_s1 = inlined_call_operand.vmem [shape: f32[40,160], index: 1, kind: input, shape index: {}]   ;;  %s397_s2 = inlined_call_operand.hbm [shape: f32[2,128], index: 2, kind: output, shape index: {}]  }
   0x1   :  { %v257_v0 = vld.sshfl [vmem:[%s395_s0] sm:$0x33 pattern:$0x76325410] }
   0x2   :  { %v23_v2 = vcombine.high %v257_v0, %v257_v0  ;;  %v27_v3 = vsel %vm26_vm0, %v257_v0, 0.0  ;;  %v260_v4 = vld.sshfl [vmem:[%s395_s0 + $0x8] sm:$0x33 pattern:$0x76325410]  ;;  %v35_v8 = vshrl.u32 %v34_v1, 7 }
   0x3   :  { %v102_v5 = vcombine.high %v260_v4, %v260_v4  ;;  %v105_v6 = vsel %vm26_vm0, %v260_v4, 0.0  ;;  %v258_v7 = vld.sshfl [vmem:[%s395_s0 + $0x4] sm:$0x33 pattern:$0x76325410] }
   0x4   :  { %v28_v9 = vsel %vm26_vm0, %v23_v2, 0.0  ;;  %v68_v10 = vcombine.high %v258_v7, %v258_v7  ;;  %v71_v11 = vsel %vm26_vm0, %v258_v7, 0.0  ;;  %v262_v12 = vld.sshfl [vmem:[%s395_s0 + $0xc] sm:$0x33 pattern:$0x76325410] }
   0x5   :  { %v29_v13 = vadd.f32 %v28_v9, %v27_v3  ;;  %v106_v14 = vsel %vm26_vm0, %v102_v5, 0.0  ;;  %v136_v15 = vcombine.high %v262_v12, %v262_v12  ;;  %v139_v16 = vsel %vm26_vm0, %v262_v12, 0.0  ;;  %v32_v17 = vld [vmem:[%s396_s1] ss:$8 sm:$0x3] }
   0x6   :  { %v107_v18 = vadd.f32 %v106_v14, %v105_v6  ;;  %v72_v19 = vsel %vm26_vm0, %v68_v10, 0.0  ;;  %v36_v20 = vsub.s32 0, %v35_v8 }
   0x7   :  { %7 = vsyncpa [#allocation3], 0  ;;  %30 = vadd.xlane.f32.xlu0 %v29_v13  ;;  %v73_v21 = vadd.f32 %v72_v19, %v71_v11  ;;  %v140_v22 = vsel %vm26_vm0, %v136_v15, 0.0  ;;  %v256_v25 = vld [vmem:[%s396_s1 + $0x4] ss:$8 sm:$0x3] }
   0x8   :  { %108 = vadd.xlane.f32.xlu1 %v107_v18  ;;  %v141_v23 = vadd.f32 %v140_v22, %v139_v16  ;;  %v37_v24 = vrot.slane %v32_v17, %v36_v20  ;;  %v50_v26 = vrot.slane %v256_v25, %v36_v20  ;;  %v261_v27 = vld [vmem:[%s396_s1 + $0x2] ss:$8 sm:$0x3]  ;;  %v259_v28 = vld [vmem:[%s396_s1 + $0x1] ss:$8 sm:$0x3] }
   0x9   :  { %v116_v29 = vrot.slane %v261_v27, %v36_v20  ;;  %v82_v30 = vrot.slane %v259_v28, %v36_v20  ;;  %v263_v31 = vld [vmem:[%s396_s1 + $0x3] ss:$8 sm:$0x3]  ;;  %v162_v33 = vld [vmem:[%s396_s1 + $0x10] sm:$0xff]  ;;  %v317_v36 = vmov 0.0|0.0   ;;  %vm318_vm1 = vmmov 0  }
   0xa   :  { %v150_v32 = vrot.slane %v263_v31, %v36_v20  ;;  %v163_v34 = vld [vmem:[%s396_s1 + $0x20] sm:$0xff]  ;;  %v164_v35 = vld [vmem:[%s396_s1 + $0x30] sm:$0xff]  ;;  %281 = vmatprep.subr.bf16.mxu0 %v317_v36  ;;  %v319_v39 = vmov 0.0   ;;  %v40_v41 = vsub.s32 1, %v35_v8  ;;  %vm166_vm2 = vcmask 261120  }
   0xb   :  { %74 = vadd.xlane.f32.xlu0 %v73_v21  ;;  %v282_v37 = vpack.c.bf16 %v163_v34, %v162_v33  ;;  %v165_v38 = vld [vmem:[%s396_s1 + $0x40] sm:$0xff]  ;;  %278 = vmatprep.mubr.msk.f32.mxu0 %vm318_vm1, %v319_v39  ;;  %s320_s1 = smov [#allocation2]  }
   0xc   :  { %142 = vadd.xlane.f32.xlu1 %v141_v23  ;;  %v285_v40 = vpack.c.bf16 %v165_v38, %v164_v35  ;;  %v41_v42 = vrot.slane %v32_v17, %v40_v41  ;;  %v54_v46 = vrot.slane %v256_v25, %v40_v41  ;;  %v86_v48 = vrot.slane %v259_v28, %v40_v41  ;;  %s248_s6 = sshll.u32 %s320_s1, 4  ;;  %s249_s6 = int_to_ptr.vmem [resolvable:$true] %s248_s6 }
   0xd   :  { %283 = vmatpush3.bf16.msra.mxu0 %v282_v37  ;;  %v120_v51 = vrot.slane %v261_v27, %v40_v41  ;;  %v154_v52 = vrot.slane %v263_v31, %v40_v41  ;;  %s293_s7 = scalar_lea.vmem %s249_s6, 32  ;;  %p298_p1 = scmp.lt.s32.totalorder %s249_s6, %s249_s6 }
   0xe   :  { %284 = vmatprep.subr.bf16.mxu0 %v317_v36  ;;  %p294_p0 = scmp.ne.s32.totalorder %s249_s6, %s293_s7  ;;  %p299_p2 = scmp.lt.s32.totalorder %s293_s7, %s293_s7 }
  0x10   :  { %p300_p3 = por %p299_p2, %p298_p1 }
  0x11   :  { %286 = vmatpush3.bf16.msra.mxu0 %v285_v40 }
  0x12   :  { %p301_p4 = pnand %p300_p3, %p294_p0 }
  0x94   :  { %v31_v43 = vpop.xlane.xlu0 %30 }
  0x95   :  { %v44_v44 = vmul.f32 %v37_v24, %v31_v43  ;;  %v45_v45 = vmul.f32 %v41_v42, %v31_v43  ;;  %v109_v47 = vpop.xlane.xlu1 %108 }
  0x96   :  { %v123_v49 = vmul.f32 %v116_v29, %v109_v47  ;;  %v124_v59 = vmul.f32 %v120_v51, %v109_v47 }
  0x97   :  { %v57_v50 = vadd.f32 %v50_v26, %v44_v44  ;;  %v58_v54 = vadd.f32 %v54_v46, %v45_v45 }
  0x98   :  { %v75_v53 = vpop.xlane.xlu0 %74 }
  0x99   :  { %v89_v55 = vmul.f32 %v82_v30, %v75_v53  ;;  %v90_v56 = vmul.f32 %v86_v48, %v75_v53  ;;  %v143_v57 = vpop.xlane.xlu1 %142 }
  0x9a   :  { %v157_v58 = vmul.f32 %v150_v32, %v143_v57  ;;  %v158_v62 = vmul.f32 %v154_v52, %v143_v57 }
  0x9b   :  { %v91_v60 = vadd.f32 %v89_v55, %v57_v50  ;;  %v92_v61 = vadd.f32 %v90_v56, %v58_v54 }
  0x9d   :  { %v126_v63 = vadd.f32 %v124_v59, %v92_v61  ;;  %v125_v0 = vadd.f32 %v123_v49, %v91_v60 }
  0x9f   :  { %v160_v1 = vadd.f32 %v158_v62, %v126_v63  ;;  %v159_v2 = vadd.f32 %v157_v58, %v125_v0 }
  0xa1   :  { %291 = vtanh.f32 %v160_v1 }
  0xab   :  { %v292_v3 = vpop.eup %291 }
  0xac   :  { %279 = vmatmul.mubr.msk.f32.vlgmr.msra.gmra.mrb[0].mxu0 %vm166_vm2, %v292_v3 }
 0x17f   :  { %v236_v4 = vpop.f32.mrb[0].mxu0 }
 0x180   :  { %v240_v5 = vadd.f32 %v236_v4, %v159_v2  ;;  %v280_v6 = vpop.f32.mrb[1].mxu0 }
 0x182   :  { %241 = vst [vmem:[#allocation2] sm:$0x3] %v240_v5 }
 0x183   :  { %304 = shalt.err (!%p301_p4)
}
 0x184   :  { %s305_s10 = scalar_lea.hbm %s397_s2, 32 }
 0x185   :  { %p306_p5 = scmp.ne.s32.totalorder %s397_s2, %s305_s10  ;;  %p309_p6 = scmp.lt.u32.totalorder %s305_s10, %s397_s2 }
 0x187   :  { %p311_p7 = pnand %p309_p6, %p306_p5 }
 0x189   :  { %314 = shalt.err (!%p311_p7)
}
 0x18a   :  { %251 = dma.vmem_to_hbm [thread:$0]  %s249_s6, 32, %s397_s2, [#allocation3]  }
 0x18b   :  { %315 = dma.done.wait [#allocation3], 32  }
 0x18c   :  { %316 = vsyncadd [#allocation3], 4294967264 }
 0x18d   :  { %255 = vsyncpa [#allocation3], 1 }

</bundles_post_ra>
